<compile_context>
chip_gen: v7x
topology: tpu7x:2x2x1
jax: 0.10.0
libtpu: 0.0.40
codegen_flags: <defaults>
</compile_context>

<pallas_src>
import jax
import jax.numpy as jnp
from jax.experimental import pallas as pl
from jax.experimental.pallas import tpu as pltpu

_VMEM_LIMIT = 48 * 1024 * 1024        # leaves headroom on v7x's 64 MiB VMEM
_NEG_INF = -1e30                      # finite mask value -> NaN-free online softmax
_ATT_PAD = 128                        # att-score projection padded to a 128-lane group
_X2_RESIDENT_BUDGET = 2 * 1024 * 1024  # max bytes of x2_out kept VMEM-resident (fused gather)


def _round_up(x, m):
    return ((x + m - 1) // m) * m


def _pick_tile(n, target):
    """Largest multiple of 128 <= min(n, target) that divides n (n is a multiple of 128)."""
    t = max(128, min(n, (target // 128) * 128))
    while n % t:
        t -= 128
    return t


def _pad_rows(x, n_pad):
    n = x.shape[0]
    if n == n_pad:
        return x
    return jnp.zeros((n_pad,) + x.shape[1:], x.dtype).at[:n].set(x)


def _blockdiag_mask(heads, ts, c):
    # mask[h*ts + s, j] = 1  iff  j // c == h   (constant, streamed once)
    row_head = jnp.arange(heads * ts) // ts
    col_head = jnp.arange(heads * c) // c
    return (row_head[:, None] == col_head[None, :]).astype(jnp.bfloat16)


def edge_index_to_adj(edge_index, num_nodes_pad):
    # int8 edge-count matrix [dst, src]; diagonal forced to exactly one self-loop
    # (matches PyG remove_self_loops + add_self_loops).  Padded rows also get a
    # self-loop so their softmax denominator is > 0 (they are sliced away later).
    # TODO(synk): int8 saturates at 127 parallel edges between one node pair.
    src, dst = edge_index[0], edge_index[1]
    adj = jnp.zeros((num_nodes_pad, num_nodes_pad), jnp.int32)
    adj = adj.at[dst, src].add(1)
    diag = jnp.arange(num_nodes_pad)
    adj = adj.at[diag, diag].set(1)
    return jnp.minimum(adj, 127).astype(jnp.int8)


# ---------------------------------------------------------------------------
# Kernels
# ---------------------------------------------------------------------------
def _proj_kernel(x_ref, w_ref, wa_ref, h_ref, a_ref):
    # One pass over x emits both h = x @ W (bf16) and the attention-score
    # projection a = x @ [W@att_src | W@att_dst | 0...] as two lane-aligned
    # outputs (no sub-vreg column extraction from a shared result).
    x = x_ref[...]
    h_ref[...] = jnp.dot(x, w_ref[...],
                         preferred_element_type=jnp.float32).astype(h_ref.dtype)
    a_ref[...] = jnp.dot(x, wa_ref[...], preferred_element_type=jnp.float32)


def _make_attn_kernel(heads, c, fuse_gather):
    hc = heads * c

    def kernel(nnz_ref, *refs):
        if fuse_gather:
            (h_ref, asrc_ref, adst_ref, adj_ref, bias_ref, mask_ref,
             ga_ref, x2_ref, out_ref) = refs[:9]
            m_sc, al_sc = refs[9:]
        else:
            (h_ref, asrc_ref, adst_ref, adj_ref, bias_ref, mask_ref,
             out_ref) = refs[:7]
            m_sc, al_sc = refs[7:]

        di = pl.program_id(0)
        si = pl.program_id(1)
        td = adj_ref.shape[0]

        @pl.when(si == 0)
        def _init():
            m_sc[...] = jnp.full(m_sc.shape, _NEG_INF, m_sc.dtype)
            al_sc[...] = jnp.zeros(al_sc.shape, al_sc.dtype)

        # Block-sparse skip: only tiles containing at least one edge do work.
        @pl.when(nnz_ref[di, si] > 0)
        def _tile():
            cnt = adj_ref[...].astype(jnp.float32)       # edge multiplicity (0 = no edge)
            has_edge = cnt > 0.0
            a_dst = adst_ref[...]                        # (td, H)
            a_src = asrc_ref[...]                        # (H, ts)

            p_parts, m_parts = [], []
            for h in range(heads):                       # static unroll; full (td, ts) tiles
                e = a_dst[:, h:h + 1] + a_src[h:h + 1, :]
                e = jnp.where(e > 0, e, 0.2 * e)                   # LeakyReLU(0.2)
                e = jnp.where(has_edge, e, _NEG_INF)               # finite mask -> no NaN
                m_prev = m_sc[:, h * c:h * c + 1]
                m_new = jnp.maximum(m_prev, jnp.max(e, axis=1, keepdims=True))
                p_parts.append((jnp.exp(e - m_new) * cnt).astype(jnp.bfloat16))
                m_parts.append(jnp.broadcast_to(m_new, (td, c)))

            # head-stacked probabilities and replicated running max
            p_all = jnp.concatenate(p_parts, axis=1)               # (td, H*ts)  bf16
            m_rep = jnp.concatenate(m_parts + m_parts, axis=1)     # (td, 2*hc)  f32
            corr = jnp.exp(m_sc[...] - m_rep)                      # (td, 2*hc)

            # One MXU matmul emits both the weighted values and the softmax
            # denominators: rhs = [blockdiag(h_src) | blockdiag(ones)].
            mask = mask_ref[...]                                   # (H*ts, hc) bf16
            h_bd = jnp.concatenate([h_ref[...]] * heads, axis=0) * mask
            rhs = jnp.concatenate([h_bd, mask], axis=1)            # (H*ts, 2*hc)
            pv = jnp.dot(p_all, rhs, preferred_element_type=jnp.float32)

            al_sc[...] = corr * al_sc[...] + pv                    # full-width update
            m_sc[...] = m_rep

        @pl.when(si == pl.num_programs(1) - 1)
        def _finalize():
            al = al_sc[...]
            inv_l = pl.reciprocal(al[:, hc:], approx=True)
            res = al[:, :hc] * inv_l + bias_ref[...]
            if fuse_gather:
                # x1_combined = x1_out + x2_out[group_assignment], fused into the
                # epilogue: one-hot (td, n2) @ x2 (n2, hc) on the MXU (bf16 x2).
                n2p = x2_ref.shape[0]
                idx = ga_ref[...]                                           # (td, 1)
                cols = jax.lax.broadcasted_iota(jnp.int32, (td, n2p), 1)
                onehot = (cols == idx).astype(jnp.bfloat16)
                res = res + jnp.dot(onehot, x2_ref[...].astype(jnp.bfloat16),
                                    preferred_element_type=jnp.float32)
            out_ref[...] = res.astype(out_ref.dtype)

    return kernel


# ---------------------------------------------------------------------------
# Wrappers
# ---------------------------------------------------------------------------
def gat_conv(x, edge_index, w_bf16, wa_bf16, bias, heads, out_channels,
             gather_src=None, gather_idx=None):
    n, f_in = x.shape
    c = out_channels
    hc = heads * c
    n_pad = _round_up(max(n, 128), 128)
    x_p = _pad_rows(x.astype(jnp.float32), n_pad)
    adj = edge_index_to_adj(edge_index, n_pad)

    # ---- fused projection (one pass over x; two lane-aligned outputs) -------
    tm = _pick_tile(n_pad, 512)
    h_bf16, a = pl.pallas_call(
        _proj_kernel,
        out_shape=(jax.ShapeDtypeStruct((n_pad, hc), jnp.bfloat16),
                   jax.ShapeDtypeStruct((n_pad, _ATT_PAD), jnp.float32)),
        grid_spec=pltpu.PrefetchScalarGridSpec(
            num_scalar_prefetch=0,
            grid=(n_pad // tm,),
            in_specs=[pl.BlockSpec((tm, f_in), lambda i: (i, 0)),
                      pl.BlockSpec((f_in, hc), lambda i: (0, 0)),
                      pl.BlockSpec((f_in, _ATT_PAD), lambda i: (0, 0))],
            out_specs=[pl.BlockSpec((tm, hc), lambda i: (i, 0)),
                       pl.BlockSpec((tm, _ATT_PAD), lambda i: (i, 0))]),
        compiler_params=pltpu.CompilerParams(
            dimension_semantics=("parallel",),
            vmem_limit_bytes=_VMEM_LIMIT),
    )(x_p.astype(jnp.bfloat16), w_bf16, wa_bf16)

    a_src_t = a[:, :heads].T                      # (H, n_pad)  tiny transpose
    a_dst = a[:, heads:2 * heads]                 # (n_pad, H)

    # ---- tiles: dst parallel (>=2 tiles if possible), src reduction last ----
    td = _pick_tile(n_pad, 512)
    if n_pad // td < 2 and td > 128:
        td = _pick_tile(n_pad, td // 2)
    ts = _pick_tile(n_pad, 1024)
    ndt, nst = n_pad // td, n_pad // ts

    # per-tile edge counts -> SMEM, lets the kernel skip empty (td, ts) blocks
    tile_nnz = adj.astype(jnp.int32).reshape(ndt, td, nst, ts).sum(axis=(1, 3))
    bd_mask = _blockdiag_mask(heads, ts, c)

    fuse = gather_src is not None
    operands = [tile_nnz, h_bf16, a_src_t, a_dst, adj,
                bias.reshape(1, hc), bd_mask]
    in_specs = [
        pl.BlockSpec((ts, hc), lambda di, si, nnz: (si, 0)),          # h (src rows)
        pl.BlockSpec((heads, ts), lambda di, si, nnz: (0, si)),       # a_src^T
        pl.BlockSpec((td, heads), lambda di, si, nnz: (di, 0)),       # a_dst
        pl.BlockSpec((td, ts), lambda di, si, nnz: (di, si)),         # adj counts
        pl.BlockSpec((1, hc), lambda di, si, nnz: (0, 0)),            # bias
        pl.BlockSpec((heads * ts, hc), lambda di, si, nnz: (0, 0)),   # blockdiag mask
    ]
    if fuse:
        n2 = gather_src.shape[0]
        n2p = _round_up(n2, 8)
        x2_res = _pad_rows(gather_src.astype(jnp.float32), n2p)
        ga = jnp.clip(gather_idx.astype(jnp.int32), 0, n2 - 1)
        ga_p = _pad_rows(ga.reshape(-1, 1), n_pad)
        operands += [ga_p, x2_res]
        in_specs += [pl.BlockSpec((td, 1), lambda di, si, nnz: (di, 0)),
                     pl.BlockSpec((n2p, hc), lambda di, si, nnz: (0, 0))]

    out = pl.pallas_call(
        _make_attn_kernel(heads, c, fuse),
        out_shape=jax.ShapeDtypeStruct((n_pad, hc), jnp.float32),
        grid_spec=pltpu.PrefetchScalarGridSpec(
            num_scalar_prefetch=1,
            grid=(ndt, nst),
            in_specs=in_specs,
            out_specs=pl.BlockSpec((td, hc), lambda di, si, nnz: (di, 0)),
            scratch_shapes=[pltpu.VMEM((td, 2 * hc), jnp.float32),    # running max (replicated)
                            pltpu.VMEM((td, 2 * hc), jnp.float32)]),  # [acc | denom]
        compiler_params=pltpu.CompilerParams(
            dimension_semantics=("parallel", "arbitrary"),
            vmem_limit_bytes=_VMEM_LIMIT),
    )(*operands)
    return out[:n]


class DualGATConvPallas:
    def __init__(self, in_channels, out_channels, heads, dropout, att_type, key):
        del dropout, att_type  # inference-mode; standard GATv1 attention
        assert 2 * heads <= _ATT_PAD
        self.heads = heads
        self.out_channels = out_channels
        hc = heads * out_channels
        ks = jax.random.split(key, 6)
        scale_w = (2.0 / (in_channels + hc)) ** 0.5
        scale_a = (2.0 / (out_channels + 1)) ** 0.5

        def mk(k, shape, scale):
            return (scale * jax.random.normal(k, shape)).astype(jnp.float32)

        def prep(w, att_src, att_dst):
            f_in = w.shape[0]
            w3 = w.reshape(f_in, heads, out_channels)
            wa = jnp.zeros((f_in, _ATT_PAD), jnp.float32)
            wa = wa.at[:, :heads].set(jnp.einsum('fhc,hc->fh', w3, att_src))
            wa = wa.at[:, heads:2 * heads].set(jnp.einsum('fhc,hc->fh', w3, att_dst))
            return w.astype(jnp.bfloat16), wa.astype(jnp.bfloat16)

        self.w1, self.wa1 = prep(mk(ks[0], (in_channels, hc), scale_w),
                                 mk(ks[1], (heads, out_channels), scale_a),
                                 mk(ks[2], (heads, out_channels), scale_a))
        self.bias1 = jnp.zeros((hc,), jnp.float32)
        self.w2, self.wa2 = prep(mk(ks[3], (in_channels, hc), scale_w),
                                 mk(ks[4], (heads, out_channels), scale_a),
                                 mk(ks[5], (heads, out_channels), scale_a))
        self.bias2 = jnp.zeros((hc,), jnp.float32)

    def __call__(self, x1, edge_index1, x2, edge_index2, group_assignment):
        # graph 2 first: its output feeds the fused gather+add in graph 1's epilogue
        x2_out = gat_conv(x2, edge_index2, self.w2, self.wa2, self.bias2,
                          self.heads, self.out_channels)
        hc = self.heads * self.out_channels
        if x2_out.shape[0] * hc * 4 <= _X2_RESIDENT_BUDGET:
            x1_combined = gat_conv(x1, edge_index1, self.w1, self.wa1, self.bias1,
                                   self.heads, self.out_channels,
                                   gather_src=x2_out, gather_idx=group_assignment)
        else:
            # TODO(synk): for very large graph-2 (x2_out not VMEM-resident) fall back
            # to un-fused attention + XLA gather/add; a DMA-gather Pallas kernel would
            # be needed to keep this fully fused at that scale.
            x1_out = gat_conv(x1, edge_index1, self.w1, self.wa1, self.bias1,
                              self.heads, self.out_channels)
            idx = jnp.clip(group_assignment.astype(jnp.int32), 0, x2_out.shape[0] - 1)
            x1_combined = x1_out + x2_out[idx]
        return x1_combined, x2_out


# ---------------------------------------------------------------------------
# Demo
# ---------------------------------------------------------------------------
if __name__ == "__main__":
    key = jax.random.PRNGKey(0)
    k_x1, k_x2, k_e1, k_e2, k_ga, k_params = jax.random.split(key, 6)

    N1, N2 = 16, 16
    in_channels, out_channels, heads = 16, 16, 4
    E1, E2 = 32, 32

    x1 = jax.random.normal(k_x1, (N1, in_channels), jnp.float32)
    x2 = jax.random.normal(k_x2, (N2, in_channels), jnp.float32)
    edge_index1 = jax.random.randint(k_e1, (2, E1), 0, N1, jnp.int32)
    edge_index2 = jax.random.randint(k_e2, (2, E2), 0, N2, jnp.int32)
    group_assignment = jax.random.randint(k_ga, (N1,), 0, N2, jnp.int32)

    model = DualGATConvPallas(in_channels, out_channels, heads,
                              dropout=0.0, att_type="MX", key=k_params)

    x1_combined, x2_out = model(x1, edge_index1, x2, edge_index2,
                                group_assignment)
    jax.block_until_ready((x1_combined, x2_out))

    assert x1_combined.shape == (N1, heads * out_channels)
    assert x2_out.shape == (N2, heads * out_channels)
    assert bool(jnp.all(jnp.isfinite(x1_combined)))
    assert bool(jnp.all(jnp.isfinite(x2_out)))
    print("KERNEL_OK")
</pallas_src>

<mosaic_0001>
module attributes {stable_mosaic.version = 11 : i64} {
  func.func @_proj_kernel(%arg0: i32, %arg1: memref<128x16xbf16, #tpu.memory_space<vmem>>, %arg2: memref<16x64xbf16, #tpu.memory_space<vmem>>, %arg3: memref<16x128xbf16, #tpu.memory_space<vmem>>, %arg4: memref<128x64xbf16, #tpu.memory_space<vmem>>, %arg5: memref<128x128xf32, #tpu.memory_space<vmem>>) attributes {dimension_semantics = [#tpu.dimension_semantics<parallel>], iteration_bounds = array<i64: 1>, scalar_prefetch = 0 : i64, scratch_operands = 0 : i64, tpu.core_type = #tpu.core_type<tc>, window_params = [{transform_indices = @transform_0, window_bounds = array<i64: 128, 16>}, {pipeline_mode = #tpu.pipeline_mode<synchronous>, transform_indices = @transform_1, window_bounds = array<i64: 16, 64>}, {pipeline_mode = #tpu.pipeline_mode<synchronous>, transform_indices = @transform_2, window_bounds = array<i64: 16, 128>}, {transform_indices = @transform_3, window_bounds = array<i64: 128, 64>}, {transform_indices = @transform_4, window_bounds = array<i64: 128, 128>}]} {
    %c0 = arith.constant 0 : index
    %c0_0 = arith.constant 0 : index
    %0 = vector.load %arg1[%c0, %c0_0] : memref<128x16xbf16, #tpu.memory_space<vmem>>, vector<128x16xbf16>
    %c0_1 = arith.constant 0 : index
    %c0_2 = arith.constant 0 : index
    %1 = vector.load %arg2[%c0_1, %c0_2] : memref<16x64xbf16, #tpu.memory_space<vmem>>, vector<16x64xbf16>
    %cst = arith.constant dense<0.000000e+00> : vector<128x64xf32>
    %2 = tpu.matmul %0, %1, %cst {dimension_numbers = #tpu.dot_dimension_numbers<[1], [0], [0], [1], [0, 0, 1, 1], [], []>} : vector<128x16xbf16>, vector<16x64xbf16>, vector<128x64xf32> -> vector<128x64xf32>
    %3 = arith.truncf %2 : vector<128x64xf32> to vector<128x64xbf16>
    %c0_3 = arith.constant 0 : index
    %c0_4 = arith.constant 0 : index
    %4 = vector.load %arg4[%c0_3, %c0_4] : memref<128x64xbf16, #tpu.memory_space<vmem>>, vector<128x64xbf16>
    tpu.vector_store %arg4[%c0_3, %c0_4], %3 {strides = array<i32>} : memref<128x64xbf16, #tpu.memory_space<vmem>>, vector<128x64xbf16>,
    %c0_5 = arith.constant 0 : index
    %c0_6 = arith.constant 0 : index
    %5 = vector.load %arg3[%c0_5, %c0_6] : memref<16x128xbf16, #tpu.memory_space<vmem>>, vector<16x128xbf16>
    %cst_7 = arith.constant dense<0.000000e+00> : vector<128x128xf32>
    %6 = tpu.matmul %0, %5, %cst_7 {dimension_numbers = #tpu.dot_dimension_numbers<[1], [0], [0], [1], [0, 0, 1, 1], [], []>} : vector<128x16xbf16>, vector<16x128xbf16>, vector<128x128xf32> -> vector<128x128xf32>
    %c0_8 = arith.constant 0 : index
    %c0_9 = arith.constant 0 : index
    %7 = vector.load %arg5[%c0_8, %c0_9] : memref<128x128xf32, #tpu.memory_space<vmem>>, vector<128x128xf32>
    tpu.vector_store %arg5[%c0_8, %c0_9], %6 {strides = array<i32>} : memref<128x128xf32, #tpu.memory_space<vmem>>, vector<128x128xf32>,
    return
  }
  func.func @transform_0(%arg0: i32) -> (i32, i32) {
    %c0_i32 = arith.constant 0 : i32
    %c0_i32_0 = arith.constant 0 : i32
    return %arg0, %c0_i32 : i32, i32
  }
  func.func @transform_1(%arg0: i32) -> (i32, i32) {
    %c0_i32 = arith.constant 0 : i32
    %c0_i32_0 = arith.constant 0 : i32
    %c0_i32_1 = arith.constant 0 : i32
    return %c0_i32, %c0_i32_0 : i32, i32
  }
  func.func @transform_2(%arg0: i32) -> (i32, i32) {
    %c0_i32 = arith.constant 0 : i32
    %c0_i32_0 = arith.constant 0 : i32
    %c0_i32_1 = arith.constant 0 : i32
    return %c0_i32, %c0_i32_0 : i32, i32
  }
  func.func @transform_3(%arg0: i32) -> (i32, i32) {
    %c0_i32 = arith.constant 0 : i32
    %c0_i32_0 = arith.constant 0 : i32
    return %arg0, %c0_i32 : i32, i32
  }
  func.func @transform_4(%arg0: i32) -> (i32, i32) {
    %c0_i32 = arith.constant 0 : i32
    %c0_i32_0 = arith.constant 0 : i32
    return %arg0, %c0_i32 : i32, i32
  }
}

</mosaic_0001>

<bundles_post_ra>
// kernel: tpu_custom_call.1
= control target key start
LH: loop header
LB: loop body
LE: loop exit
PB: predicated region body
PF: predicated region fallthrough
CT: control target
= control target key end

     0   :  { %vm82_vm0 = vcmask 130048   ;;  %s732_s0 = inlined_call_operand.vmem [shape: bf16[128,16], index: 0, kind: input, shape index: {}]   ;;  %s733_s1 = inlined_call_operand.vmem [shape: bf16[16,64], index: 1, kind: input, shape index: {}]   ;;  %s734_s2 = inlined_call_operand.vmem [shape: bf16[16,128], index: 2, kind: input, shape index: {}]   ;;  %s735_s3 = inlined_call_operand.vmem [shape: bf16[128,64], index: 3, kind: output, shape index: {0}]   ;;  %s736_s4 = inlined_call_operand.hbm [shape: f32[128,128], index: 4, kind: output, shape index: {1}]  }
   0x1   :  { %v541_v0 = vld [vmem:[%s733_s1] sm:$0xff]   ;;  %v544_v3 = vld [vmem:[%s732_s0 + $0x8] sm:$0xff]   ;;  %v545_v4 = vld [vmem:[%s732_s0 + $0x10] sm:$0xff]  }
   0x2   :  { %v542_v1 = vld [vmem:[%s734_s2] sm:$0xff]   ;;  %502 = vmatprep.subr.bf16.mxu0 %v541_v0  ;;  %v546_v5 = vld [vmem:[%s732_s0 + $0x18] sm:$0xff]  }
   0x3   :  { %v543_v2 = vld [vmem:[%s732_s0] sm:$0xff]   ;;  %520 = vmatprep.subr.bf16.mxu1 %v542_v1  ;;  %503 = vmatpush3.bf16.msra.mxu0 %v541_v0 }
   0x4   :  { %521 = vmatpush3.bf16.msra.mxu1 %v542_v1  ;;  %504 = vmatprep.mubr.msk.bf16.mxu0 %vm82_vm0, %v543_v2 }
   0x5   :  { %522 = vmatprep.mubr.msk.bf16.mxu1 %vm82_vm0, %v543_v2 }
   0x6   :  { %505 = vmatmul.mubr.msk.bf16.vlgmr.msra.gmra.mrb[0].mxu0 %vm82_vm0, %v544_v3 }
   0x7   :  { %523 = vmatmul.mubr.msk.bf16.vlgmr.msra.gmra.mrb[0].mxu1 %vm82_vm0, %v544_v3  ;;  %508 = vmatprep.mubr.msk.bf16.mxu0 %vm82_vm0, %v545_v4 }
   0x8   :  { %526 = vmatprep.mubr.msk.bf16.mxu1 %vm82_vm0, %v545_v4 }
   0x9   :  { %10 = vsyncpa [#allocation3], 0  ;;  %v547_v6 = vld [vmem:[%s732_s0 + $0x20] sm:$0xff]   ;;  %v548_v7 = vld [vmem:[%s732_s0 + $0x28] sm:$0xff]   ;;  %vm268_vm1 = vcmask 519168   ;;  %s575_s28 = smov [#allocation2]  }
   0xa   :  { %v549_v8 = vld [vmem:[%s732_s0 + $0x30] sm:$0xff]   ;;  %v550_v9 = vld [vmem:[%s732_s0 + $0x38] sm:$0xff]   ;;  %s413_s29 = sshll.u32 %s575_s28, 4  ;;  %s697_s29 = int_to_ptr.vmem [resolvable:$true] %s413_s29 }
   0xb   :  { %s551_s11 = scalar_lea.vmem %s697_s29, 2048  ;;  %p556_p1 = scmp.lt.s32.totalorder %s697_s29, %s697_s29 }
   0xc   :  { %p552_p0 = scmp.ne.s32.totalorder %s697_s29, %s551_s11  ;;  %p557_p2 = scmp.lt.s32.totalorder %s551_s11, %s551_s11 }
   0xe   :  { %509 = vmatmul.mubr.msk.bf16.gmra.mrb[4].mxu0 %vm82_vm0, %v546_v5  ;;  %p558_p3 = por %p557_p2, %p556_p1 }
   0xf   :  { %527 = vmatmul.mubr.msk.bf16.gmra.mrb[4].mxu1 %vm82_vm0, %v546_v5  ;;  %512 = vmatprep.mubr.msk.bf16.mxu0 %vm82_vm0, %v547_v6 }
  0x10   :  { %530 = vmatprep.mubr.msk.bf16.mxu1 %vm82_vm0, %v547_v6  ;;  %p559_p4 = pnand %p558_p3, %p552_p0 }
  0x16   :  { %513 = vmatmul.mubr.msk.bf16.gmra.mrb[8].mxu0 %vm82_vm0, %v548_v7 }
  0x17   :  { %531 = vmatmul.mubr.msk.bf16.gmra.mrb[8].mxu1 %vm82_vm0, %v548_v7  ;;  %516 = vmatprep.mubr.msk.bf16.mxu0 %vm82_vm0, %v549_v8 }
  0x18   :  { %534 = vmatprep.mubr.msk.bf16.mxu1 %vm82_vm0, %v549_v8 }
  0x1e   :  { %517 = vmatmul.mubr.msk.bf16.gmra.mrb[12].mxu0 %vm82_vm0, %v550_v9 }
  0x1f   :  { %535 = vmatmul.mubr.msk.bf16.gmra.mrb[12].mxu1 %vm82_vm0, %v550_v9 }
  0xd9   :  { %v506_v10 = vpop.f32.mrb[0].mxu0 }
  0xda   :  { %v470_v11 = vpack.c.bf16 %v506_v10, %v506_v10  ;;  %v524_v12 = vpop.f32.mrb[0].mxu1  ;;  %v141_v13 = vpop.f32.mrb[1].mxu0 }
  0xdb   :  { %392 = vst [vmem:[#allocation2 + $0x10] sm:$0xff] %v524_v12  ;;  %v468_v14 = vpack.c.bf16 %v141_v13, %v141_v13  ;;  %v327_v15 = vpop.f32.mrb[1].mxu1  ;;  %v507_v16 = vpop.f32.mrb[2].mxu0 }
  0xdc   :  { %271 = vst.msk [vmem:[%s735_s3 + $0x8] sm:$0xf] %vm268_vm1, %v470_v11  ;;  %390 = vst [vmem:[#allocation2] sm:$0xff] %v327_v15  ;;  %v471_v17 = vpack.c.bf16 %v507_v16, %v507_v16  ;;  %v525_v18 = vpop.f32.mrb[2].mxu1  ;;  %v144_v19 = vpop.f32.mrb[3].mxu0 }
  0xdd   :  { %269 = vst.msk [vmem:[%s735_s3] sm:$0xf] %vm268_vm1, %v468_v14  ;;  %393 = vst [vmem:[#allocation2 + $0x18] sm:$0xff] %v525_v18  ;;  %v469_v20 = vpack.c.bf16 %v144_v19, %v144_v19  ;;  %v330_v21 = vpop.f32.mrb[3].mxu1 }
  0xde   :  { %272 = vst.msk [vmem:[%s735_s3 + $0xc] sm:$0xf] %vm268_vm1, %v471_v17  ;;  %391 = vst [vmem:[#allocation2 + $0x8] sm:$0xff] %v330_v21 }
  0xdf   :  { %270 = vst.msk [vmem:[%s735_s3 + $0x4] sm:$0xf] %vm268_vm1, %v469_v20 }
  0xe1   :  { %v510_v22 = vpop.f32.mrb[4].mxu0 }
  0xe2   :  { %v474_v23 = vpack.c.bf16 %v510_v22, %v510_v22  ;;  %v528_v24 = vpop.f32.mrb[4].mxu1  ;;  %v157_v25 = vpop.f32.mrb[5].mxu0 }
  0xe3   :  { %396 = vst [vmem:[#allocation2 + $0x30] sm:$0xff] %v528_v24  ;;  %v472_v26 = vpack.c.bf16 %v157_v25, %v157_v25  ;;  %v343_v27 = vpop.f32.mrb[5].mxu1  ;;  %v511_v28 = vpop.f32.mrb[6].mxu0 }
  0xe4   :  { %275 = vst.msk [vmem:[%s735_s3 + $0x18] sm:$0xf] %vm268_vm1, %v474_v23  ;;  %394 = vst [vmem:[#allocation2 + $0x20] sm:$0xff] %v343_v27  ;;  %v475_v29 = vpack.c.bf16 %v511_v28, %v511_v28  ;;  %v529_v30 = vpop.f32.mrb[6].mxu1  ;;  %v160_v31 = vpop.f32.mrb[7].mxu0 }
  0xe5   :  { %273 = vst.msk [vmem:[%s735_s3 + $0x10] sm:$0xf] %vm268_vm1, %v472_v26  ;;  %397 = vst [vmem:[#allocation2 + $0x38] sm:$0xff] %v529_v30  ;;  %v473_v32 = vpack.c.bf16 %v160_v31, %v160_v31  ;;  %v346_v33 = vpop.f32.mrb[7].mxu1 }
  0xe6   :  { %276 = vst.msk [vmem:[%s735_s3 + $0x1c] sm:$0xf] %vm268_vm1, %v475_v29  ;;  %395 = vst [vmem:[#allocation2 + $0x28] sm:$0xff] %v346_v33 }
  0xe7   :  { %274 = vst.msk [vmem:[%s735_s3 + $0x14] sm:$0xf] %vm268_vm1, %v473_v32 }
  0xe9   :  { %v514_v34 = vpop.f32.mrb[8].mxu0 }
  0xea   :  { %v478_v35 = vpack.c.bf16 %v514_v34, %v514_v34  ;;  %v532_v36 = vpop.f32.mrb[8].mxu1  ;;  %v173_v37 = vpop.f32.mrb[9].mxu0 }
  0xeb   :  { %400 = vst [vmem:[#allocation2 + $0x50] sm:$0xff] %v532_v36  ;;  %v476_v38 = vpack.c.bf16 %v173_v37, %v173_v37  ;;  %v359_v39 = vpop.f32.mrb[9].mxu1  ;;  %v515_v40 = vpop.f32.mrb[10].mxu0 }
  0xec   :  { %279 = vst.msk [vmem:[%s735_s3 + $0x28] sm:$0xf] %vm268_vm1, %v478_v35  ;;  %398 = vst [vmem:[#allocation2 + $0x40] sm:$0xff] %v359_v39  ;;  %v479_v41 = vpack.c.bf16 %v515_v40, %v515_v40  ;;  %v533_v42 = vpop.f32.mrb[10].mxu1  ;;  %v176_v43 = vpop.f32.mrb[11].mxu0 }
  0xed   :  { %277 = vst.msk [vmem:[%s735_s3 + $0x20] sm:$0xf] %vm268_vm1, %v476_v38  ;;  %401 = vst [vmem:[#allocation2 + $0x58] sm:$0xff] %v533_v42  ;;  %v477_v44 = vpack.c.bf16 %v176_v43, %v176_v43  ;;  %v362_v45 = vpop.f32.mrb[11].mxu1 }
  0xee   :  { %280 = vst.msk [vmem:[%s735_s3 + $0x2c] sm:$0xf] %vm268_vm1, %v479_v41  ;;  %399 = vst [vmem:[#allocation2 + $0x48] sm:$0xff] %v362_v45 }
  0xef   :  { %278 = vst.msk [vmem:[%s735_s3 + $0x24] sm:$0xf] %vm268_vm1, %v477_v44 }
  0xf1   :  { %v518_v46 = vpop.f32.mrb[12].mxu0 }
  0xf2   :  { %v482_v47 = vpack.c.bf16 %v518_v46, %v518_v46  ;;  %v536_v48 = vpop.f32.mrb[12].mxu1  ;;  %v189_v49 = vpop.f32.mrb[13].mxu0 }
  0xf3   :  { %404 = vst [vmem:[#allocation2 + $0x70] sm:$0xff] %v536_v48  ;;  %v480_v50 = vpack.c.bf16 %v189_v49, %v189_v49  ;;  %v375_v51 = vpop.f32.mrb[13].mxu1  ;;  %v519_v52 = vpop.f32.mrb[14].mxu0 }
  0xf4   :  { %283 = vst.msk [vmem:[%s735_s3 + $0x38] sm:$0xf] %vm268_vm1, %v482_v47  ;;  %402 = vst [vmem:[#allocation2 + $0x60] sm:$0xff] %v375_v51  ;;  %v483_v53 = vpack.c.bf16 %v519_v52, %v519_v52  ;;  %v537_v54 = vpop.f32.mrb[14].mxu1  ;;  %v192_v55 = vpop.f32.mrb[15].mxu0 }
  0xf5   :  { %281 = vst.msk [vmem:[%s735_s3 + $0x30] sm:$0xf] %vm268_vm1, %v480_v50  ;;  %405 = vst [vmem:[#allocation2 + $0x78] sm:$0xff] %v537_v54  ;;  %v481_v56 = vpack.c.bf16 %v192_v55, %v192_v55  ;;  %v378_v57 = vpop.f32.mrb[15].mxu1 }
  0xf6   :  { %284 = vst.msk [vmem:[%s735_s3 + $0x3c] sm:$0xf] %vm268_vm1, %v483_v53  ;;  %403 = vst [vmem:[#allocation2 + $0x68] sm:$0xff] %v378_v57 }
  0xf7   :  { %282 = vst.msk [vmem:[%s735_s3 + $0x34] sm:$0xf] %vm268_vm1, %v481_v56 }
  0xf8   :  { %562 = shalt.err (!%p559_p4)
}
  0xf9   :  { %s563_s14 = scalar_lea.hbm %s736_s4, 2048 }
  0xfa   :  { %p564_p5 = scmp.ne.s32.totalorder %s736_s4, %s563_s14  ;;  %p567_p6 = scmp.lt.u32.totalorder %s563_s14, %s736_s4 }
  0xfc   :  { %p569_p7 = pnand %p567_p6, %p564_p5 }
  0xfe   :  { %572 = shalt.err (!%p569_p7)
}
  0xff   :  { %s576_s3 = smov 128   ;;  %s577_s19 = smov 8  }
 0x100   :  { %419 = dma.vmem_to_hbm [thread:$0]  %s697_s29, 2048, %s736_s4, [#allocation3], %s576_s3, %s576_s3, %s577_s19  }
 0x101   :  { %573 = dma.done.wait [#allocation3], 2048  }
 0x102   :  { %574 = vsyncadd [#allocation3], 4294965248 }
 0x103   :  { %425 = vsyncpa [#allocation3], 1 }

</bundles_post_ra>
